<compile_context>
chip_gen: v5e
topology: v5e:2x2
jax: 0.10.0
libtpu: 0.0.40
codegen_flags: <defaults>
</compile_context>

<pallas_src>
import jax
import jax.numpy as jnp
from jax.experimental import pallas as pl
from jax.experimental.pallas import tpu as pltpu

D_IN, D_H1, D_H2, D_OUT = 230, 256, 128, 64


def _round_up(n, m):
    return ((n + m - 1) // m) * m


def _num_tensorcores_per_chip():
    """2 TensorCores/chip on v7x; 1 on v5e/v6e.  Best-effort device-kind sniff."""
    try:
        kind = jax.devices()[0].device_kind.lower()
    except Exception:
        return 1
    return 2 if ("v7" in kind or "7x" in kind) else 1


def _pick_tm(n, num_cores):
    """Row-tile size.
    Multi-core (v7x): guarantee >= 2*num_cores grid steps so the "parallel" grid axis shards
    across both TensorCores (cap 512 rows/tile).
    Single-core (v5e/v6e): the grid is a serial loop, so use the biggest tile that amortizes
    per-step overhead (up to 1024 rows ~ a few MiB of VMEM)."""
    n8 = _round_up(max(n, 1), 8)
    if num_cores >= 2:
        tm = _round_up(pl.cdiv(n8, 2 * num_cores), 8)
        return max(8, min(tm, 512))
    if n8 >= 8192:
        return 1024
    if n8 >= 2048:
        return 512
    if n8 >= 512:
        return 256
    return min(n8, 256)


def _encoder_kernel(x_ref, w1_ref, b1_ref, w2_ref, b2_ref, w3_ref, b3_ref, o_ref):
    # Cast the loaded x tile to the weight dtype in-register (no-op for f32; enables the
    # bf16-native MXU path for bf16-prepped weights without an extra HBM pass over x).
    x = x_ref[...].astype(w1_ref.dtype)
    # Layer 1: Linear(230->256) + ReLU   (Dropout -> identity in eval mode)
    h = jnp.dot(x, w1_ref[...], preferred_element_type=jnp.float32)
    h = jnp.maximum(h + b1_ref[...], 0.0)
    # Layer 2: Linear(256->128) + ReLU   (Dropout -> identity in eval mode)
    h = jnp.dot(h.astype(w2_ref.dtype), w2_ref[...], preferred_element_type=jnp.float32)
    h = jnp.maximum(h + b2_ref[...], 0.0)
    # Layer 3: Linear(128->64) + ReLU  (output written lane-width 64 == full dim, no padding)
    h = jnp.dot(h.astype(w3_ref.dtype), w3_ref[...], preferred_element_type=jnp.float32)
    o_ref[...] = jnp.maximum(h + b3_ref[...], 0.0).astype(o_ref.dtype)


def prepare_params(w1, b1, w2, b2, w3, b3, compute_dtype=jnp.float32):
    """One-time parameter prep (hoisted out of the per-call forward): cast weights to the
    compute dtype (f32 default, bf16 optional); biases stay f32 for the f32 epilogue."""
    cd = jnp.dtype(compute_dtype)
    return (w1.astype(cd), b1.astype(jnp.float32),
            w2.astype(cd), b2.astype(jnp.float32),
            w3.astype(cd), b3.astype(jnp.float32))


@jax.jit
def encoder_classic2_forward(x, w1, b1, w2, b2, w3, b3):
    """Eval-mode forward.  x: (1, N, 230) or (N, 230).  Returns (N, 64) float32."""
    if x.ndim == 3:
        x = x[0]          # x.squeeze(0)
    n = x.shape[0]

    tm = _pick_tm(n, _num_tensorcores_per_chip())
    grid = (pl.cdiv(n, tm),)

    in_specs = [
        pl.BlockSpec((tm, D_IN), lambda i: (i, 0)),     # x row tile (unpadded: 230 == full dim)
        pl.BlockSpec((D_IN, D_H1), lambda i: (0, 0)),   # W1 (full, VMEM-resident)
        pl.BlockSpec((1, D_H1), lambda i: (0, 0)),      # b1
        pl.BlockSpec((D_H1, D_H2), lambda i: (0, 0)),   # W2
        pl.BlockSpec((1, D_H2), lambda i: (0, 0)),      # b2
        pl.BlockSpec((D_H2, D_OUT), lambda i: (0, 0)),  # W3 (unpadded: 64 == full dim)
        pl.BlockSpec((1, D_OUT), lambda i: (0, 0)),     # b3
    ]
    out_specs = pl.BlockSpec((tm, D_OUT), lambda i: (i, 0))   # direct (N, 64) writeback

    x_elt = jnp.dtype(x.dtype).itemsize
    w_elt = jnp.dtype(w1.dtype).itemsize
    cost = pl.CostEstimate(
        flops=2 * n * (D_IN * D_H1 + D_H1 * D_H2 + D_H2 * D_OUT),
        transcendentals=0,
        bytes_accessed=(n * D_IN * x_elt
                        + (D_IN * D_H1 + D_H1 * D_H2 + D_H2 * D_OUT) * w_elt
                        + (D_H1 + D_H2 + D_OUT) * 4
                        + n * D_OUT * 4),
    )

    return pl.pallas_call(
        _encoder_kernel,
        out_shape=jax.ShapeDtypeStruct((n, D_OUT), jnp.float32),
        grid_spec=pltpu.PrefetchScalarGridSpec(
            num_scalar_prefetch=0,
            grid=grid,
            in_specs=in_specs,
            out_specs=out_specs,
        ),
        compiler_params=pltpu.CompilerParams(
            dimension_semantics=("parallel",),
        ),
        cost_estimate=cost,
    )(x, w1, b1, w2, b2, w3, b3)


def init_params(key):
    """Deterministic init mimicking torch.nn.Linear default (U(-1/sqrt(fan_in), 1/sqrt(fan_in))).
    Weights stored as (in, out) so the kernel does x @ W (same math as x @ W_torch.T)."""
    ks = jax.random.split(key, 6)

    def lin(kw, kb, fan_in, fan_out):
        bound = 1.0 / jnp.sqrt(fan_in)
        w = jax.random.uniform(kw, (fan_in, fan_out), jnp.float32, -bound, bound)
        b = jax.random.uniform(kb, (1, fan_out), jnp.float32, -bound, bound)
        return w, b

    w1, b1 = lin(ks[0], ks[1], D_IN, D_H1)
    w2, b2 = lin(ks[2], ks[3], D_H1, D_H2)
    w3, b3 = lin(ks[4], ks[5], D_H2, D_OUT)
    return w1, b1, w2, b2, w3, b3


def _reference(x2d, w1, b1, w2, b2, w3, b3):
    ref = jnp.maximum(x2d @ w1 + b1, 0.0)
    ref = jnp.maximum(ref @ w2 + b2, 0.0)
    ref = jnp.maximum(ref @ w3 + b3, 0.0)
    return ref


if __name__ == "__main__":
    key = jax.random.PRNGKey(0)
    k_param, k_x1, k_x2 = jax.random.split(key, 3)
    params_f32 = init_params(k_param)
    w1, b1, w2, b2, w3, b3 = prepare_params(*params_f32)   # one-time prep (f32: no-op casts)

    # Small deterministic input, shaped like the PyTorch module expects: (1, N, 230)
    N = 8
    x = jax.random.normal(k_x1, (1, N, D_IN), jnp.float32)
    out = jax.block_until_ready(encoder_classic2_forward(x, w1, b1, w2, b2, w3, b3))
    ref = _reference(x[0], *params_f32)
    assert out.shape == (N, D_OUT)
    assert jnp.allclose(out, ref, atol=1e-4, rtol=1e-4)

    # Larger batch exercising a multi-step grid with a ragged last tile.
    N2 = 300
    x2 = jax.random.normal(k_x2, (N2, D_IN), jnp.float32)
    out2 = jax.block_until_ready(encoder_classic2_forward(x2, w1, b1, w2, b2, w3, b3))
    ref2 = _reference(x2, *params_f32)
    assert out2.shape == (N2, D_OUT)
    assert jnp.allclose(out2, ref2, atol=1e-4, rtol=1e-4)

    # Optional bf16-weight path (halves weight HBM stream, bf16-native MXU); looser tolerance.
    bf16_params = prepare_params(*params_f32, compute_dtype=jnp.bfloat16)
    out_bf16 = jax.block_until_ready(encoder_classic2_forward(x2, *bf16_params))
    assert out_bf16.shape == (N2, D_OUT)
    assert jnp.allclose(out_bf16, ref2, atol=1e-1, rtol=1e-1)

    print("KERNEL_OK")
</pallas_src>

<mosaic_0001>
module attributes {stable_mosaic.version = 11 : i64} {
  func.func @_encoder_kernel(%arg0: i32, %arg1: memref<8x230xf32, #tpu.memory_space<vmem>>, %arg2: memref<230x256xf32, #tpu.memory_space<vmem>>, %arg3: memref<1x256xf32, #tpu.memory_space<vmem>>, %arg4: memref<256x128xf32, #tpu.memory_space<vmem>>, %arg5: memref<1x128xf32, #tpu.memory_space<vmem>>, %arg6: memref<128x64xf32, #tpu.memory_space<vmem>>, %arg7: memref<1x64xf32, #tpu.memory_space<vmem>>, %arg8: memref<8x64xf32, #tpu.memory_space<vmem>>) attributes {dimension_semantics = [#tpu.dimension_semantics<parallel>], iteration_bounds = array<i64: 1>, scalar_prefetch = 0 : i64, scratch_operands = 0 : i64, tpu.core_type = #tpu.core_type<tc>, window_params = [{transform_indices = @transform_0, window_bounds = array<i64: 8, 230>}, {pipeline_mode = #tpu.pipeline_mode<synchronous>, transform_indices = @transform_1, window_bounds = array<i64: 230, 256>}, {pipeline_mode = #tpu.pipeline_mode<synchronous>, transform_indices = @transform_2, window_bounds = array<i64: 1, 256>}, {pipeline_mode = #tpu.pipeline_mode<synchronous>, transform_indices = @transform_3, window_bounds = array<i64: 256, 128>}, {pipeline_mode = #tpu.pipeline_mode<synchronous>, transform_indices = @transform_4, window_bounds = array<i64: 1, 128>}, {pipeline_mode = #tpu.pipeline_mode<synchronous>, transform_indices = @transform_5, window_bounds = array<i64: 128, 64>}, {pipeline_mode = #tpu.pipeline_mode<synchronous>, transform_indices = @transform_6, window_bounds = array<i64: 1, 64>}, {transform_indices = @transform_7, window_bounds = array<i64: 8, 64>}]} {
    %c0 = arith.constant 0 : index
    %c0_0 = arith.constant 0 : index
    %0 = vector.load %arg1[%c0, %c0_0] : memref<8x230xf32, #tpu.memory_space<vmem>>, vector<8x230xf32>
    %c0_1 = arith.constant 0 : index
    %c0_2 = arith.constant 0 : index
    %1 = vector.load %arg2[%c0_1, %c0_2] : memref<230x256xf32, #tpu.memory_space<vmem>>, vector<230x256xf32>
    %cst = arith.constant dense<0.000000e+00> : vector<8x256xf32>
    %2 = tpu.matmul %0, %1, %cst {dimension_numbers = #tpu.dot_dimension_numbers<[1], [0], [0], [1], [0, 0, 1, 1], [], []>} : vector<8x230xf32>, vector<230x256xf32>, vector<8x256xf32> -> vector<8x256xf32>
    %c0_3 = arith.constant 0 : index
    %c0_4 = arith.constant 0 : index
    %3 = vector.load %arg3[%c0_3, %c0_4] : memref<1x256xf32, #tpu.memory_space<vmem>>, vector<1x256xf32>
    %4 = vector.broadcast %3 : vector<1x256xf32> to vector<8x256xf32>
    %5 = arith.addf %2, %4 : vector<8x256xf32>
    %cst_5 = arith.constant 0.000000e+00 : f32
    %6 = vector.broadcast %cst_5 : f32 to vector<8x256xf32>
    %7 = arith.maximumf %5, %6 : vector<8x256xf32>
    %c0_6 = arith.constant 0 : index
    %c0_7 = arith.constant 0 : index
    %8 = vector.load %arg4[%c0_6, %c0_7] : memref<256x128xf32, #tpu.memory_space<vmem>>, vector<256x128xf32>
    %cst_8 = arith.constant dense<0.000000e+00> : vector<8x128xf32>
    %9 = tpu.matmul %7, %8, %cst_8 {dimension_numbers = #tpu.dot_dimension_numbers<[1], [0], [0], [1], [0, 0, 1, 1], [], []>} : vector<8x256xf32>, vector<256x128xf32>, vector<8x128xf32> -> vector<8x128xf32>
    %c0_9 = arith.constant 0 : index
    %c0_10 = arith.constant 0 : index
    %10 = vector.load %arg5[%c0_9, %c0_10] : memref<1x128xf32, #tpu.memory_space<vmem>>, vector<1x128xf32>
    %11 = vector.broadcast %10 : vector<1x128xf32> to vector<8x128xf32>
    %12 = arith.addf %9, %11 : vector<8x128xf32>
    %cst_11 = arith.constant 0.000000e+00 : f32
    %13 = vector.broadcast %cst_11 : f32 to vector<8x128xf32>
    %14 = arith.maximumf %12, %13 : vector<8x128xf32>
    %c0_12 = arith.constant 0 : index
    %c0_13 = arith.constant 0 : index
    %15 = vector.load %arg6[%c0_12, %c0_13] : memref<128x64xf32, #tpu.memory_space<vmem>>, vector<128x64xf32>
    %cst_14 = arith.constant dense<0.000000e+00> : vector<8x64xf32>
    %16 = tpu.matmul %14, %15, %cst_14 {dimension_numbers = #tpu.dot_dimension_numbers<[1], [0], [0], [1], [0, 0, 1, 1], [], []>} : vector<8x128xf32>, vector<128x64xf32>, vector<8x64xf32> -> vector<8x64xf32>
    %c0_15 = arith.constant 0 : index
    %c0_16 = arith.constant 0 : index
    %17 = vector.load %arg7[%c0_15, %c0_16] : memref<1x64xf32, #tpu.memory_space<vmem>>, vector<1x64xf32>
    %18 = vector.broadcast %17 : vector<1x64xf32> to vector<8x64xf32>
    %19 = arith.addf %16, %18 : vector<8x64xf32>
    %cst_17 = arith.constant 0.000000e+00 : f32
    %20 = vector.broadcast %cst_17 : f32 to vector<8x64xf32>
    %21 = arith.maximumf %19, %20 : vector<8x64xf32>
    %c0_18 = arith.constant 0 : index
    %c0_19 = arith.constant 0 : index
    %22 = vector.load %arg8[%c0_18, %c0_19] : memref<8x64xf32, #tpu.memory_space<vmem>>, vector<8x64xf32>
    tpu.vector_store %arg8[%c0_18, %c0_19], %21 {strides = array<i32>} : memref<8x64xf32, #tpu.memory_space<vmem>>, vector<8x64xf32>,
    return
  }
  func.func @transform_0(%arg0: i32) -> (i32, i32) {
    %c0_i32 = arith.constant 0 : i32
    %c0_i32_0 = arith.constant 0 : i32
    return %arg0, %c0_i32 : i32, i32
  }
  func.func @transform_1(%arg0: i32) -> (i32, i32) {
    %c0_i32 = arith.constant 0 : i32
    %c0_i32_0 = arith.constant 0 : i32
    %c0_i32_1 = arith.constant 0 : i32
    return %c0_i32, %c0_i32_0 : i32, i32
  }
  func.func @transform_2(%arg0: i32) -> (i32, i32) {
    %c0_i32 = arith.constant 0 : i32
    %c0_i32_0 = arith.constant 0 : i32
    %c0_i32_1 = arith.constant 0 : i32
    return %c0_i32, %c0_i32_0 : i32, i32
  }
  func.func @transform_3(%arg0: i32) -> (i32, i32) {
    %c0_i32 = arith.constant 0 : i32
    %c0_i32_0 = arith.constant 0 : i32
    %c0_i32_1 = arith.constant 0 : i32
    return %c0_i32, %c0_i32_0 : i32, i32
  }
  func.func @transform_4(%arg0: i32) -> (i32, i32) {
    %c0_i32 = arith.constant 0 : i32
    %c0_i32_0 = arith.constant 0 : i32
    %c0_i32_1 = arith.constant 0 : i32
    return %c0_i32, %c0_i32_0 : i32, i32
  }
  func.func @transform_5(%arg0: i32) -> (i32, i32) {
    %c0_i32 = arith.constant 0 : i32
    %c0_i32_0 = arith.constant 0 : i32
    %c0_i32_1 = arith.constant 0 : i32
    return %c0_i32, %c0_i32_0 : i32, i32
  }
  func.func @transform_6(%arg0: i32) -> (i32, i32) {
    %c0_i32 = arith.constant 0 : i32
    %c0_i32_0 = arith.constant 0 : i32
    %c0_i32_1 = arith.constant 0 : i32
    return %c0_i32, %c0_i32_0 : i32, i32
  }
  func.func @transform_7(%arg0: i32) -> (i32, i32) {
    %c0_i32 = arith.constant 0 : i32
    %c0_i32_0 = arith.constant 0 : i32
    return %arg0, %c0_i32 : i32, i32
  }
}

</mosaic_0001>

<bundles_post_ra>
// kernel: encoder_classic2_forward.1
= control target key start
LH: loop header
LB: loop body
LE: loop exit
PB: predicated region body
PF: predicated region fallthrough
CT: control target
= control target key end

     0   :  { %12 = vsyncpa [#allocation3], 0  ;;  %s570_s0 = inlined_call_operand.vmem [shape: f32[8,230], index: 0, kind: input, shape index: {}]   ;;  %s571_s1 = inlined_call_operand.hbm [shape: f32[230,256], index: 1, kind: input, shape index: {}]   ;;  %s572_s2 = inlined_call_operand.vmem [shape: f32[1,256], index: 2, kind: input, shape index: {}]   ;;  %s573_s3 = inlined_call_operand.hbm [shape: f32[256,128], index: 3, kind: input, shape index: {}]   ;;  %s574_s4 = inlined_call_operand.vmem [shape: f32[1,128], index: 4, kind: input, shape index: {}]   ;;  %s575_s5 = inlined_call_operand.vmem [shape: f32[128,64], index: 5, kind: input, shape index: {}]   ;;  %s576_s6 = inlined_call_operand.vmem [shape: f32[1,64], index: 6, kind: input, shape index: {}]   ;;  %s577_s7 = inlined_call_operand.hbm [shape: f32[8,64], index: 7, kind: output, shape index: {}]  }
   0x1   :  { %13 = vsyncpa [#allocation6], 0 }
   0x2   :  { %14 = vsyncpa [#allocation4], 0  ;;  %s21_s26 = sshll.u32 %s571_s1, 4  ;;  %s447_s27 = smov [#allocation2]   ;;  %s22_s26 = int_to_ptr.hbm [resolvable:$true] %s21_s26 }
   0x3   :  { %s23_s28 = sshll.u32 %s447_s27, 4  ;;  %s36_s8 = sshll.u32 %s573_s3, 4  ;;  %s24_s28 = int_to_ptr.vmem [resolvable:$true] %s23_s28  ;;  %s37_s8 = int_to_ptr.hbm [resolvable:$true] %s36_s8 }
   0x4   :  { %s448_s9 = smov 256   ;;  %s449_s10 = smov 16  }
   0x5   :  { %29 = dma.hbm_to_vmem [thread:$0]  %s22_s26, 7424, %s24_s28, [#allocation3], %s448_s9, %s448_s9, %s449_s10  }
   0x6   :  { %s450_s11 = smov [#allocation5]   ;;  %s451_s13 = smov 128  }
   0x7   :  { %s38_s12 = sshll.u32 %s450_s11, 4  ;;  %s452_s14 = smov 8   ;;  %s39_s12 = int_to_ptr.vmem [resolvable:$true] %s38_s12 }
   0x8   :  { %44 = dma.hbm_to_vmem [thread:$0]  %s37_s8, 4096, %s39_s12, [#allocation6], %s451_s13, %s451_s13, %s452_s14  }
   0x9   :  { %441 = dma.done.wait [#allocation3], 7424  }
   0xa   :  { %442 = vsyncadd [#allocation3], 4294959872 }
   0xb   :  { %443 = dma.done.wait [#allocation6], 4096  }
   0xc   :  { %444 = vsyncadd [#allocation6], 4294963200  ;;  %vm129_vm0 = vcmask 1045504   ;;  %v92_v0 = vld [vmem:[#allocation2 + $0xf8] sm:$0xff]  ;;  %v90_v1 = vld [vmem:[#allocation2 + $0xe8] sm:$0xff]  ;;  %vm125_vm1 = vcmask 834560  }
   0xd   :  { %176 = vmatpush.msra.mxu2 %v92_v0  ;;  %v118_v2 = vld [vmem:[#allocation2 + $0x1c8] sm:$0x3f]  ;;  %v88_v3 = vld [vmem:[#allocation2 + $0xd8] sm:$0xff]  ;;  %v91_v4 = vld [vmem:[#allocation2 + $0xf0] sm:$0xff]  ;;  %s453_s27 = smov [#allocation7]   ;;  %s345_s30 = sshll.u32 %s577_s7, 4  ;;  %s346_s30 = int_to_ptr.hbm [resolvable:$true] %s345_s30 }
   0xe   :  { %358 = vmatpush.msk.msra.mxu3 %vm129_vm0, %v118_v2  ;;  %v116_v5 = vld [vmem:[#allocation2 + $0x1b8] sm:$0xff]  ;;  %136 = vmatpush.msra.mxu0 %v91_v4  ;;  %v89_v6 = vld [vmem:[#allocation2 + $0xe0] sm:$0xff]  ;;  %v114_v7 = vld [vmem:[#allocation2 + $0x1a8] sm:$0xff]  ;;  %s343_s28 = sshll.u32 %s453_s27, 4  ;;  %vm336_vm2 = vcmask 523264   ;;  %s344_s28 = int_to_ptr.vmem [resolvable:$true] %s343_s28 }
   0xf   :  { %177 = vmatpush.msra.mxu2 %v90_v1  ;;  %v86_v8 = vld [vmem:[#allocation2 + $0xc8] sm:$0xff]  ;;  %v87_v9 = vld [vmem:[#allocation2 + $0xd0] sm:$0xff]  ;;  %v112_v10 = vld [vmem:[#allocation2 + $0x198] sm:$0xff] }
  0x10   :  { %200 = vmatpush.msra.mxu3 %v116_v5  ;;  %137 = vmatpush.msra.mxu0 %v89_v6  ;;  %v84_v11 = vld [vmem:[#allocation2 + $0xb8] sm:$0xff]  ;;  %v85_v12 = vld [vmem:[#allocation2 + $0xc0] sm:$0xff]  ;;  %v110_v14 = vld [vmem:[#allocation2 + $0x188] sm:$0xff] }
  0x11   :  { %178 = vmatpush.msra.mxu2 %v88_v3  ;;  %v117_v13 = vld [vmem:[#allocation2 + $0x1c0] sm:$0x3f]  ;;  %v115_v15 = vld [vmem:[#allocation2 + $0x1b0] sm:$0xff]  ;;  %v82_v16 = vld [vmem:[#allocation2 + $0xa8] sm:$0xff] }
  0x12   :  { %201 = vmatpush.msra.mxu3 %v114_v7  ;;  %138 = vmatpush.msra.mxu0 %v87_v9  ;;  %v83_v17 = vld [vmem:[#allocation2 + $0xb0] sm:$0xff]  ;;  %v108_v18 = vld [vmem:[#allocation2 + $0x178] sm:$0xff]  ;;  %v113_v19 = vld [vmem:[#allocation2 + $0x1a0] sm:$0xff] }
  0x13   :  { %179 = vmatpush.msra.mxu2 %v86_v8  ;;  %356 = vmatpush.msk.msra.mxu1 %vm129_vm0, %v117_v13  ;;  %v80_v20 = vld [vmem:[#allocation2 + $0x98] sm:$0xff]  ;;  %v81_v21 = vld [vmem:[#allocation2 + $0xa0] sm:$0xff]  ;;  %v106_v22 = vld [vmem:[#allocation2 + $0x168] sm:$0xff] }
  0x14   :  { %202 = vmatpush.msra.mxu3 %v112_v10  ;;  %139 = vmatpush.msra.mxu0 %v85_v12  ;;  %v111_v23 = vld [vmem:[#allocation2 + $0x190] sm:$0xff]  ;;  %v78_v24 = vld [vmem:[#allocation2 + $0x88] sm:$0xff]  ;;  %v104_v26 = vld [vmem:[#allocation2 + $0x158] sm:$0xff] }
  0x15   :  { %180 = vmatpush.msra.mxu2 %v84_v11  ;;  %160 = vmatpush.msra.mxu1 %v115_v15  ;;  %v79_v25 = vld [vmem:[#allocation2 + $0x90] sm:$0xff]  ;;  %v109_v27 = vld [vmem:[#allocation2 + $0x180] sm:$0xff]  ;;  %v76_v28 = vld [vmem:[#allocation2 + $0x78] sm:$0xff] }
  0x16   :  { %203 = vmatpush.msra.mxu3 %v110_v14  ;;  %140 = vmatpush.msra.mxu0 %v83_v17  ;;  %v77_v29 = vld [vmem:[#allocation2 + $0x80] sm:$0xff]  ;;  %v102_v30 = vld [vmem:[#allocation2 + $0x148] sm:$0xff]  ;;  %v107_v31 = vld [vmem:[#allocation2 + $0x170] sm:$0xff] }
  0x17   :  { %181 = vmatpush.msra.mxu2 %v82_v16  ;;  %161 = vmatpush.msra.mxu1 %v113_v19  ;;  %v74_v32 = vld [vmem:[#allocation2 + $0x68] sm:$0xff]  ;;  %v75_v33 = vld [vmem:[#allocation2 + $0x70] sm:$0xff]  ;;  %v100_v34 = vld [vmem:[#allocation2 + $0x138] sm:$0xff] }
  0x18   :  { %204 = vmatpush.msra.mxu3 %v108_v18  ;;  %141 = vmatpush.msra.mxu0 %v81_v21  ;;  %v105_v35 = vld [vmem:[#allocation2 + $0x160] sm:$0xff]  ;;  %v72_v36 = vld [vmem:[#allocation2 + $0x58] sm:$0xff]  ;;  %v98_v38 = vld [vmem:[#allocation2 + $0x128] sm:$0xff] }
  0x19   :  { %182 = vmatpush.msra.mxu2 %v80_v20  ;;  %162 = vmatpush.msra.mxu1 %v111_v23  ;;  %v73_v37 = vld [vmem:[#allocation2 + $0x60] sm:$0xff]  ;;  %v103_v39 = vld [vmem:[#allocation2 + $0x150] sm:$0xff]  ;;  %v70_v40 = vld [vmem:[#allocation2 + $0x48] sm:$0xff] }
  0x1a   :  { %205 = vmatpush.msra.mxu3 %v106_v22  ;;  %142 = vmatpush.msra.mxu0 %v79_v25  ;;  %v71_v41 = vld [vmem:[#allocation2 + $0x50] sm:$0xff]  ;;  %v96_v42 = vld [vmem:[#allocation2 + $0x118] sm:$0xff]  ;;  %v101_v43 = vld [vmem:[#allocation2 + $0x140] sm:$0xff] }
  0x1b   :  { %183 = vmatpush.msra.mxu2 %v78_v24  ;;  %163 = vmatpush.msra.mxu1 %v109_v27  ;;  %v68_v44 = vld [vmem:[#allocation2 + $0x38] sm:$0xff]  ;;  %v69_v45 = vld [vmem:[#allocation2 + $0x40] sm:$0xff]  ;;  %v94_v46 = vld [vmem:[#allocation2 + $0x108] sm:$0xff] }
  0x1c   :  { %206 = vmatpush.msra.mxu3 %v104_v26  ;;  %143 = vmatpush.msra.mxu0 %v77_v29  ;;  %v99_v47 = vld [vmem:[#allocation2 + $0x130] sm:$0xff]  ;;  %v66_v48 = vld [vmem:[#allocation2 + $0x28] sm:$0xff]  ;;  %v97_v51 = vld [vmem:[#allocation2 + $0x120] sm:$0xff] }
  0x1d   :  { %184 = vmatpush.msra.mxu2 %v76_v28  ;;  %164 = vmatpush.msra.mxu1 %v107_v31  ;;  %v60_v49 = vld [vmem:[%s570_s0 + $0x8] sm:$0xff]  ;;  %v67_v50 = vld [vmem:[#allocation2 + $0x30] sm:$0xff]  ;;  %v64_v52 = vld [vmem:[#allocation2 + $0x18] sm:$0xff] }
  0x1e   :  { %207 = vmatpush.msra.mxu3 %v102_v30  ;;  %144 = vmatpush.msra.mxu0 %v75_v33  ;;  %v249_v53 = vld [vmem:[#allocation5 + $0xf8] sm:$0xff]  ;;  %v65_v54 = vld [vmem:[#allocation2 + $0x20] sm:$0xff]  ;;  %v95_v55 = vld [vmem:[#allocation2 + $0x110] sm:$0xff] }
  0x1f   :  { %185 = vmatpush.msra.mxu2 %v74_v32  ;;  %165 = vmatpush.msra.mxu1 %v105_v35  ;;  %v62_v56 = vld [vmem:[#allocation2 + $0x8] sm:$0xff]  ;;  %v248_v57 = vld [vmem:[#allocation5 + $0xf0] sm:$0xff]  ;;  %v63_v59 = vld [vmem:[#allocation2 + $0x10] sm:$0xff] }
  0x20   :  { %208 = vmatpush.msra.mxu3 %v100_v34  ;;  %145 = vmatpush.msra.mxu0 %v73_v37  ;;  %v59_v58 = vld [vmem:[%s570_s0] sm:$0xff]  ;;  %v247_v61 = vld [vmem:[#allocation5 + $0xe8] sm:$0xff]  ;;  %v233_v63 = vld [vmem:[#allocation5 + $0x78] sm:$0xff] }
  0x21   :  { %186 = vmatpush.msra.mxu2 %v72_v36  ;;  %166 = vmatpush.msra.mxu1 %v103_v39  ;;  %v93_v60 = vld [vmem:[#allocation2 + $0x100] sm:$0xff]  ;;  %v246_v0 = vld [vmem:[#allocation5 + $0xe0] sm:$0xff]  ;;  %v245_v2 = vld [vmem:[#allocation5 + $0xd8] sm:$0xff] }
  0x22   :  { %209 = vmatpush.msra.mxu3 %v98_v38  ;;  %146 = vmatpush.msra.mxu0 %v71_v41  ;;  %v61_v62 = vld [vmem:[#allocation2] sm:$0xff]  ;;  %v231_v3 = vld [vmem:[#allocation5 + $0x68] sm:$0xff]  ;;  %v230_v5 = vld [vmem:[#allocation5 + $0x60] sm:$0xff] }
  0x23   :  { %187 = vmatpush.msra.mxu2 %v70_v40  ;;  %167 = vmatpush.msra.mxu1 %v101_v43  ;;  %v232_v1 = vld [vmem:[#allocation5 + $0x70] sm:$0xff]  ;;  %v243_v6 = vld [vmem:[#allocation5 + $0xc8] sm:$0xff]  ;;  %v229_v7 = vld [vmem:[#allocation5 + $0x58] sm:$0xff] }
  0x24   :  { %210 = vmatpush.msra.mxu3 %v96_v42  ;;  %147 = vmatpush.msra.mxu0 %v69_v45  ;;  %v244_v4 = vld [vmem:[#allocation5 + $0xd0] sm:$0xff]  ;;  %v242_v8 = vld [vmem:[#allocation5 + $0xc0] sm:$0xff]  ;;  %v241_v10 = vld [vmem:[#allocation5 + $0xb8] sm:$0xff] }
  0x25   :  { %188 = vmatpush.msra.mxu2 %v68_v44  ;;  %168 = vmatpush.msra.mxu1 %v99_v47  ;;  %v228_v9 = vld [vmem:[#allocation5 + $0x50] sm:$0xff]  ;;  %v227_v11 = vld [vmem:[#allocation5 + $0x48] sm:$0xff]  ;;  %v226_v13 = vld [vmem:[#allocation5 + $0x40] sm:$0xff] }
  0x26   :  { %211 = vmatpush.msra.mxu3 %v94_v46  ;;  %148 = vmatpush.msra.mxu0 %v67_v50  ;;  %v240_v12 = vld [vmem:[#allocation5 + $0xb0] sm:$0xff]  ;;  %v239_v14 = vld [vmem:[#allocation5 + $0xa8] sm:$0xff]  ;;  %v225_v15 = vld [vmem:[#allocation5 + $0x38] sm:$0xff] }
  0x27   :  { %189 = vmatpush.msra.mxu2 %v66_v48  ;;  %359 = vmatmul.msk.f32.vlgmr.msra.gmra.mxu3 %vm125_vm1, %v60_v49  ;;  %v238_v16 = vld [vmem:[#allocation5 + $0xa0] sm:$0xff]  ;;  %v224_v17 = vld [vmem:[#allocation5 + $0x30] sm:$0xff]  ;;  %v223_v18 = vld [vmem:[#allocation5 + $0x28] sm:$0xff] }
  0x28   :  { %169 = vmatpush.msra.mxu1 %v97_v51  ;;  %274 = vmatpush.msrb.mxu3 %v249_v53  ;;  %v237_v19 = vld [vmem:[#allocation5 + $0x98] sm:$0xff]  ;;  %v222_v20 = vld [vmem:[#allocation5 + $0x20] sm:$0xff]  ;;  %v236_v21 = vld [vmem:[#allocation5 + $0x90] sm:$0xff] }
  0x29   :  { %190 = vmatpush.msra.mxu2 %v64_v52  ;;  %149 = vmatpush.msra.mxu0 %v65_v54  ;;  %v221_v22 = vld [vmem:[#allocation5 + $0x18] sm:$0xff]  ;;  %v235_v23 = vld [vmem:[#allocation5 + $0x88] sm:$0xff]  ;;  %v220_v24 = vld [vmem:[#allocation5 + $0x10] sm:$0xff] }
  0x2a   :  { %170 = vmatpush.msra.mxu1 %v95_v55  ;;  %275 = vmatpush.msrb.mxu3 %v248_v57  ;;  %v234_v25 = vld [vmem:[#allocation5 + $0x80] sm:$0xff]  ;;  %v219_v26 = vld [vmem:[#allocation5 + $0x8] sm:$0xff]  ;;  %v308_v30 = vld [vmem:[%s575_s5 + $0x68] sm:$0xff] }
  0x2b   :  { %191 = vmatpush.msra.mxu2 %v62_v56  ;;  %150 = vmatpush.msra.mxu0 %v63_v59  ;;  %v218_v27 = vld [vmem:[#allocation5] sm:$0xff]  ;;  %v310_v28 = vld [vmem:[%s575_s5 + $0x78] sm:$0xff]  ;;  %v307_v31 = vld [vmem:[%s575_s5 + $0x60] sm:$0xff] }
  0x2c   :  { %192 = vmatmul.f32.vlgmr.msra.gmra.mxu2 %v59_v58  ;;  %171 = vmatpush.msra.mxu1 %v93_v60  ;;  %v309_v29 = vld [vmem:[%s575_s5 + $0x70] sm:$0xff]  ;;  %v306_v32 = vld [vmem:[%s575_s5 + $0x58] sm:$0xff]  ;;  %v304_v34 = vld [vmem:[%s575_s5 + $0x48] sm:$0xff] }
  0x2d   :  { %276 = vmatpush.msrb.mxu3 %v247_v61  ;;  %151 = vmatpush.msra.mxu0 %v61_v62  ;;  %v305_v33 = vld [vmem:[%s575_s5 + $0x50] sm:$0xff]  ;;  %v303_v35 = vld [vmem:[%s575_s5 + $0x40] sm:$0xff]  ;;  %v302_v36 = vld [vmem:[%s575_s5 + $0x38] sm:$0xff] }
  0x2e   :  { %357 = vmatmul.msk.f32.vlgmr.msra.gmra.mxu1 %vm125_vm1, %v60_v49  ;;  %152 = vmatmul.f32.vlgmr.msra.gmra.mxu0 %v59_v58  ;;  %v301_v37 = vld [vmem:[%s575_s5 + $0x30] sm:$0xff]  ;;  %v119_v38 = vld [vmem:[%s572_s2] sm:$0x3]  ;;  %v300_v39 = vld [vmem:[%s575_s5 + $0x28] sm:$0xff] }
  0x2f   :  { %254 = vmatpush.msrb.mxu1 %v233_v63  ;;  %277 = vmatpush.msrb.mxu3 %v246_v0  ;;  %v121_v40 = vperm.slane %v119_v38, 0  ;;  %v299_v41 = vld [vmem:[%s575_s5 + $0x20] sm:$0xff]  ;;  %v122_v42 = vperm.slane %v119_v38, 1  ;;  %v298_v53 = vld [vmem:[%s575_s5 + $0x18] sm:$0xff]  ;;  %v297_v54 = vld [vmem:[%s575_s5 + $0x10] sm:$0xff] }
  0x30   :  { %315 = vmatpush.msrb.mxu0 %v310_v28  ;;  %v296_v55 = vld [vmem:[%s575_s5 + $0x8] sm:$0xff]  ;;  %v295_v56 = vld [vmem:[%s575_s5] sm:$0xff] }
  0x31   :  { %255 = vmatpush.msrb.mxu1 %v232_v1  ;;  %278 = vmatpush.msrb.mxu3 %v245_v2  ;;  %v367_v57 = vld [vmem:[%s574_s4] ss:$0 sm:$0xff] }
  0x32   :  { %316 = vmatpush.msrb.mxu0 %v309_v29  ;;  %v368_v63 = vld [vmem:[%s576_s6] ss:$0 sm:$0xff] }
  0x33   :  { %256 = vmatpush.msrb.mxu1 %v231_v3  ;;  %279 = vmatpush.msrb.mxu3 %v244_v4 }
  0x34   :  { %317 = vmatpush.msrb.mxu0 %v308_v30 }
  0x35   :  { %257 = vmatpush.msrb.mxu1 %v230_v5  ;;  %280 = vmatpush.msrb.mxu3 %v243_v6 }
  0x36   :  { %318 = vmatpush.msrb.mxu0 %v307_v31 }
  0x37   :  { %258 = vmatpush.msrb.mxu1 %v229_v7  ;;  %281 = vmatpush.msrb.mxu3 %v242_v8 }
  0x38   :  { %319 = vmatpush.msrb.mxu0 %v306_v32 }
  0x39   :  { %259 = vmatpush.msrb.mxu1 %v228_v9  ;;  %282 = vmatpush.msrb.mxu3 %v241_v10 }
  0x3a   :  { %320 = vmatpush.msrb.mxu0 %v305_v33 }
  0x3b   :  { %260 = vmatpush.msrb.mxu1 %v227_v11  ;;  %283 = vmatpush.msrb.mxu3 %v240_v12 }
  0x3c   :  { %321 = vmatpush.msrb.mxu0 %v304_v34 }
  0x3d   :  { %261 = vmatpush.msrb.mxu1 %v226_v13  ;;  %284 = vmatpush.msrb.mxu3 %v239_v14 }
  0x3e   :  { %322 = vmatpush.msrb.mxu0 %v303_v35 }
  0x3f   :  { %262 = vmatpush.msrb.mxu1 %v225_v15  ;;  %285 = vmatpush.msrb.mxu3 %v238_v16 }
  0x40   :  { %323 = vmatpush.msrb.mxu0 %v302_v36 }
  0x41   :  { %263 = vmatpush.msrb.mxu1 %v224_v17  ;;  %286 = vmatpush.msrb.mxu3 %v237_v19 }
  0x42   :  { %324 = vmatpush.msrb.mxu0 %v301_v37 }
  0x43   :  { %264 = vmatpush.msrb.mxu1 %v223_v18  ;;  %287 = vmatpush.msrb.mxu3 %v236_v21 }
  0x44   :  { %325 = vmatpush.msrb.mxu0 %v300_v39 }
  0x45   :  { %265 = vmatpush.msrb.mxu1 %v222_v20  ;;  %288 = vmatpush.msrb.mxu3 %v235_v23 }
  0x46   :  { %326 = vmatpush.msrb.mxu0 %v299_v41 }
  0x47   :  { %266 = vmatpush.msrb.mxu1 %v221_v22  ;;  %289 = vmatpush.msrb.mxu3 %v234_v25 }
  0x48   :  { %327 = vmatpush.msrb.mxu0 %v298_v53 }
  0x49   :  { %267 = vmatpush.msrb.mxu1 %v220_v24 }
  0x4a   :  { %328 = vmatpush.msrb.mxu0 %v297_v54 }
  0x4b   :  { %268 = vmatpush.msrb.mxu1 %v219_v26 }
  0x4c   :  { %329 = vmatpush.msrb.mxu0 %v296_v55 }
  0x4d   :  { %269 = vmatpush.msrb.mxu1 %v218_v27 }
  0x4e   :  { %330 = vmatpush.msrb.mxu0 %v295_v56 }
  0xaa   :  { %v213_v47 = vpop.f32.mrf.mxu3 }
  0xab   :  { %v153_v43 = vpop.f32.mrf.mxu0  ;;  %v173_v44 = vpop.f32.mrf.mxu1 }
  0xac   :  { %v154_v45 = vadd.f32 %v153_v43, %v121_v40 }
  0xae   :  { %v174_v48 = vadd.f32 %v173_v44, %v154_v45 }
  0xaf   :  { %v193_v46 = vpop.f32.mrf.mxu2 }
  0xb0   :  { %v194_v49 = vadd.f32 %v193_v46, %v122_v42  ;;  %v216_v50 = vmax.f32 %v174_v48, 0.0 }
  0xb2   :  { %v214_v51 = vadd.f32 %v213_v47, %v194_v49  ;;  %270 = vmatmul.f32.vlgmr.msrb.gmra.mxu1 %v216_v50 }
  0xb4   :  { %v217_v52 = vmax.f32 %v214_v51, 0.0 }
  0xb6   :  { %290 = vmatmul.f32.vlgmr.msrb.gmra.mxu3 %v217_v52 }
 0x12f   :  { %v271_v58 = vpop.f32.mrf.mxu1 }
 0x130   :  { %v272_v59 = vadd.f32 %v367_v57, %v271_v58 }
 0x139   :  { %v291_v60 = vpop.f32.mrf.mxu3 }
 0x13a   :  { %v292_v61 = vadd.f32 %v291_v60, %v272_v59 }
 0x13c   :  { %v294_v62 = vmax.f32 %v292_v61, 0.0 }
 0x13e   :  { %331 = vmatmul.f32.vlgmr.msrb.gmra.mxu0 %v294_v62 }
 0x1bb   :  { %v332_v0 = vpop.f32.mrf.mxu0 }
 0x1bc   :  { %v333_v1 = vadd.f32 %v368_v63, %v332_v0 }
 0x1be   :  { %v335_v2 = vmax.f32 %v333_v1, 0.0 }
 0x1c0   :  { %337 = vst.msk [vmem:[#allocation7] sm:$0xff] %vm336_vm2, %v335_v2 }
 0x1c1   :  { %348 = dma.vmem_to_hbm [thread:$0]  %s344_s28, 128, %s346_s30, [#allocation4]  }
 0x1c2   :  { %445 = dma.done.wait [#allocation4], 128  }
 0x1c3   :  { %446 = vsyncadd [#allocation4], 4294967168 }
 0x1c4   :  { %353 = vsyncpa [#allocation3], 1 }
 0x1c5   :  { %354 = vsyncpa [#allocation6], 1 }
 0x1c6   :  { %355 = vsyncpa [#allocation4], 1 }

</bundles_post_ra>
